<compile_context>
chip_gen: v5e
topology: v5e:2x2
jax: 0.10.0
libtpu: 0.0.40
codegen_flags: <defaults>
</compile_context>

<pallas_src>
import functools
from types import SimpleNamespace

import jax
import jax.numpy as jnp
from jax.experimental import pallas as pl
from jax.experimental.pallas import tpu as pltpu

STATE_DIM = 32
HIDDEN1_DIM = 128
HIDDEN2_DIM = 128
OUTPUT_DIM = 2
OUT_PAD = 8                      # lane-padded output head width (== full last dim)
N_CTX = 2
N_STATES = 16
TAB_CLASSES = N_CTX + 2 * N_STATES        # 34 one-hot classes (ctx | f1 | f2)
TAB_ROWS = 40                              # padded to a multiple of 8 sublanes
TAB_COLS = HIDDEN1_DIM + HIDDEN2_DIM       # 256: [layer1 contrib | layer2 contrib]


def _round_up(x, m):
    return (x + m - 1) // m * m


def _stepwise_mlp_kernel(idx_ref,                    # [TB, 3] int32: (ctx, f1, f2)
                         tab_ref,                    # [40, 256] block-diag folded table
                         b1_ref,                     # [1, 128]
                         w2a_ref,                    # [128, 128]  W2a (h1 part of W2^T)
                         b2_ref,                     # [1, 128]
                         w3p_ref,                    # [128, 8]   zero-padded W3^T
                         b3p_ref,                    # [1, 8]     zero-padded b3
                         out_ref, h1_ref, h2_ref):   # [TB,8], [TB,128], [TB,128]
    idx = idx_ref[...]                               # [TB, 3]
    tb = idx.shape[0]

    # ---- fused embedding gather: one-hot over 34 disjoint classes ------------
    #   rows [0, 2)   : (ctx_scale * CtxTab) @ W1a  -> layer-1 cols   [0, 128)
    #   rows [2, 18)  :  FaceTab            @ W1b  -> layer-1 cols   [0, 128)
    #   rows [18, 34) :  FaceTab            @ W2b  -> layer-2 cols [128, 256)
    cls = jax.lax.broadcasted_iota(jnp.int32, (1, TAB_ROWS), 1)          # [1, 40]
    oh = ((cls == idx[:, 0:1])
          | (cls == idx[:, 1:2] + N_CTX)
          | (cls == idx[:, 2:3] + N_CTX + N_STATES)).astype(jnp.float32)  # [TB, 40]
    combined = jnp.dot(oh, tab_ref[...], preferred_element_type=jnp.float32)  # [TB,256]

    # ---- layer 1: relu(cat([s*ctx_e, f1_e]) @ W1^T + b1) ---------------------
    h1 = jnp.maximum(combined[:, :HIDDEN1_DIM] + b1_ref[...], 0.0)

    # ---- layer 2: relu(cat([h1, f2_e]) @ W2^T + b2) --------------------------
    h2 = jnp.maximum(
        jnp.dot(h1, w2a_ref[...], preferred_element_type=jnp.float32)
        + combined[:, HIDDEN1_DIM:] + b2_ref[...], 0.0)

    # ---- output head (8-lane padded; sliced to 2 outside) --------------------
    out_ref[...] = (jnp.dot(h2, w3p_ref[...], preferred_element_type=jnp.float32)
                    + b3p_ref[...])
    h1_ref[...] = h1
    h2_ref[...] = h2


@functools.partial(jax.jit, static_argnames=("block_b",))
def stepwise_mlp_forward(params, ctx, f1, f2, ctx_scale, *, block_b=4096):
    """params: embedding tables + Linear weights (PyTorch [out, in] layout)."""
    hi = jax.lax.Precision.HIGHEST   # exact-ish f32 folding of the tiny tables

    # ---- fold tables / ctx_scale / concat-splits into small dense weights ----
    w1_t = params["w1"].T                                 # [64, 128]
    w1a, w1b = w1_t[:STATE_DIM], w1_t[STATE_DIM:]         # [32,128] each
    w2_t = params["w2"].T                                 # [160, 128]
    w2a, w2b = w2_t[:HIDDEN1_DIM], w2_t[HIDDEN1_DIM:]     # [128,128], [32,128]
    w3_t = params["w3"].T                                 # [128, 2]

    m1c = jnp.dot(ctx_scale * params["ctx_emb"], w1a, precision=hi)   # [2, 128]
    m1f = jnp.dot(params["face_emb"], w1b, precision=hi)              # [16, 128]
    m2f = jnp.dot(params["face_emb"], w2b, precision=hi)              # [16, 128]

    # block-diagonal folded table [40, 256]
    tab = jnp.zeros((TAB_ROWS, TAB_COLS), jnp.float32)
    tab = tab.at[:N_CTX, :HIDDEN1_DIM].set(m1c)
    tab = tab.at[N_CTX:N_CTX + N_STATES, :HIDDEN1_DIM].set(m1f)
    tab = tab.at[N_CTX + N_STATES:TAB_CLASSES, HIDDEN1_DIM:].set(m2f)

    b1 = params["b1"].reshape(1, HIDDEN1_DIM)
    b2 = params["b2"].reshape(1, HIDDEN2_DIM)
    w3_pad = jnp.zeros((HIDDEN2_DIM, OUT_PAD), jnp.float32).at[:, :OUTPUT_DIM].set(w3_t)
    b3_pad = jnp.zeros((1, OUT_PAD), jnp.float32).at[:, :OUTPUT_DIM].set(
        params["b3"].reshape(1, OUTPUT_DIM))

    # ---- batch tiling: choose #steps first, keep padding to a few rows -------
    B = ctx.shape[0]
    idx = jnp.stack([ctx.astype(jnp.int32), f1.astype(jnp.int32),
                     f2.astype(jnp.int32)], axis=1)                   # [B, 3]
    bq = _round_up(B, 8)
    nsteps = max(1, pl.cdiv(bq, block_b))
    if bq > 512:
        nsteps = max(nsteps, 2)    # >=2 steps: megacore split + pipelined writeback
    tb = _round_up(pl.cdiv(bq, nsteps), 8)
    bp = nsteps * tb
    if bp != B:
        # pad rows with index 0 (valid lookup); padded outputs sliced off below
        idx = jnp.pad(idx, ((0, bp - B), (0, 0)))
    grid = (nsteps,)

    def resident(shape):   # weights: same block every grid step -> stay in VMEM
        return pl.BlockSpec(shape, lambda i: (0, 0))

    def batched(shape):    # activations: tiled along the batch axis
        return pl.BlockSpec(shape, lambda i: (i, 0))

    weight_bytes = 4 * (TAB_ROWS * TAB_COLS + HIDDEN1_DIM + HIDDEN1_DIM * HIDDEN2_DIM
                        + HIDDEN2_DIM + HIDDEN2_DIM * OUT_PAD + OUT_PAD)
    cost = pl.CostEstimate(
        flops=2 * bp * (TAB_ROWS * TAB_COLS + HIDDEN1_DIM * HIDDEN2_DIM
                        + HIDDEN2_DIM * OUT_PAD),
        transcendentals=0,
        bytes_accessed=bp * (12 + 4 * (OUT_PAD + HIDDEN1_DIM + HIDDEN2_DIM))
                       + weight_bytes,
    )

    out_pad, h1, h2 = pl.pallas_call(
        _stepwise_mlp_kernel,
        grid=grid,
        out_shape=(
            jax.ShapeDtypeStruct((bp, OUT_PAD), jnp.float32),
            jax.ShapeDtypeStruct((bp, HIDDEN1_DIM), jnp.float32),
            jax.ShapeDtypeStruct((bp, HIDDEN2_DIM), jnp.float32),
        ),
        in_specs=[
            batched((tb, 3)),                       # indices
            resident((TAB_ROWS, TAB_COLS)),         # folded block-diag table
            resident((1, HIDDEN1_DIM)),             # b1
            resident((HIDDEN1_DIM, HIDDEN2_DIM)),   # w2a
            resident((1, HIDDEN2_DIM)),             # b2
            resident((HIDDEN2_DIM, OUT_PAD)),       # w3_pad
            resident((1, OUT_PAD)),                 # b3_pad
        ],
        out_specs=(
            batched((tb, OUT_PAD)),
            batched((tb, HIDDEN1_DIM)),
            batched((tb, HIDDEN2_DIM)),
        ),
        compiler_params=pltpu.CompilerParams(
            dimension_semantics=("parallel",),      # split batch across v7x's 2 TCs
            vmem_limit_bytes=48 * 1024 * 1024,      # tb=4096 uses ~17 MiB; headroom
        ),
        cost_estimate=cost,
    )(idx, tab, b1, w2a, b2, w3_pad, b3_pad)

    out = out_pad[:B, :OUTPUT_DIM]
    if bp != B:
        h1 = h1[:B]
        h2 = h2[:B]
    reps = {"hidden_f1": h1, "hidden_f2": h2}
    return out, reps


def init_params(key):
    """Deterministic parameter init matching the module's shapes.
    Embeddings: xavier-normal. Linears: PyTorch-default uniform(+-1/sqrt(fan_in))."""
    ks = jax.random.split(key, 8)

    def xavier_normal(k, shape):
        fan_in, fan_out = shape[1], shape[0]
        std = (2.0 / (fan_in + fan_out)) ** 0.5
        return std * jax.random.normal(k, shape, dtype=jnp.float32)

    def linear_init(kw, kb, out_dim, in_dim):
        bound = 1.0 / (in_dim ** 0.5)
        w = jax.random.uniform(kw, (out_dim, in_dim), jnp.float32, -bound, bound)
        b = jax.random.uniform(kb, (out_dim,), jnp.float32, -bound, bound)
        return w, b

    mlp_in1 = 2 * STATE_DIM                 # 64
    mlp_in2 = HIDDEN1_DIM + STATE_DIM       # 160

    w1, b1 = linear_init(ks[2], ks[3], HIDDEN1_DIM, mlp_in1)
    w2, b2 = linear_init(ks[4], ks[5], HIDDEN2_DIM, mlp_in2)
    w3, b3 = linear_init(ks[6], ks[7], OUTPUT_DIM, HIDDEN2_DIM)

    return {
        "ctx_emb": xavier_normal(ks[0], (N_CTX, STATE_DIM)),
        "face_emb": xavier_normal(ks[1], (N_STATES, STATE_DIM)),
        "w1": w1, "b1": b1,
        "w2": w2, "b2": b2,
        "w3": w3, "b3": b3,
    }


def reference_forward(params, ctx, f1, f2, ctx_scale):
    """Pure-JAX reference mirroring the PyTorch forward (trunc_mlp has no fwd effect)."""
    ctx_e = ctx_scale * jnp.take(params["ctx_emb"], ctx, axis=0)
    f1_e = jnp.take(params["face_emb"], f1, axis=0)
    f2_e = jnp.take(params["face_emb"], f2, axis=0)
    x = jnp.concatenate([ctx_e, f1_e], axis=1)
    h1 = jax.nn.relu(x @ params["w1"].T + params["b1"])
    x = jnp.concatenate([h1, f2_e], axis=1)
    h2 = jax.nn.relu(x @ params["w2"].T + params["b2"])
    out = h2 @ params["w3"].T + params["b3"]
    return out, {"hidden_f1": h1, "hidden_f2": h2}


def _check(params, ctx, f1, f2, ctx_scale, **kw):
    out, reps = stepwise_mlp_forward(params, ctx, f1, f2, ctx_scale, **kw)
    jax.block_until_ready((out, reps))
    ref_out, ref_reps = reference_forward(params, ctx, f1, f2, ctx_scale)
    B = ctx.shape[0]
    assert out.shape == (B, OUTPUT_DIM)
    assert reps["hidden_f1"].shape == (B, HIDDEN1_DIM)
    assert reps["hidden_f2"].shape == (B, HIDDEN2_DIM)
    assert jnp.allclose(out, ref_out, atol=1e-5, rtol=1e-5)
    assert jnp.allclose(reps["hidden_f1"], ref_reps["hidden_f1"], atol=1e-5, rtol=1e-5)
    assert jnp.allclose(reps["hidden_f2"], ref_reps["hidden_f2"], atol=1e-5, rtol=1e-5)
    return out, reps


if __name__ == "__main__":
    # args equivalent (use_images=False -> face embedding table, not CNN)
    args = SimpleNamespace(use_images=False, ctx_order="ctx_first",
                           trunc_mlp=False, ctx_scale=1.0, measure_grad_norm=False)
    # TODO(synk): use_images=True (CNN face encoder) branch not implemented; only the
    # embedding-table branch of StepwiseMLP is translated.

    root = jax.random.PRNGKey(0)
    k_params, k_ctx, k_f1, k_f2 = jax.random.split(root, 4)
    params = init_params(k_params)

    # small batch (single grid step)
    B = 8
    ctx = jax.random.randint(k_ctx, (B,), 0, N_CTX, dtype=jnp.int32)
    f1 = jax.random.randint(k_f1, (B,), 0, N_STATES, dtype=jnp.int32)
    f2 = jax.random.randint(k_f2, (B,), 0, N_STATES, dtype=jnp.int32)
    _check(params, ctx, f1, f2, args.ctx_scale)

    # non-multiple-of-8 batch to exercise the padding / remainder path
    B2 = 13
    ctx2 = jax.random.randint(k_f2, (B2,), 0, N_CTX, dtype=jnp.int32)
    f12 = jax.random.randint(k_ctx, (B2,), 0, N_STATES, dtype=jnp.int32)
    f22 = jax.random.randint(k_f1, (B2,), 0, N_STATES, dtype=jnp.int32)
    _check(params, ctx2, f12, f22, args.ctx_scale)

    # moderate batch with a small block to exercise the multi-step grid
    B3 = 1043
    ctx3 = jax.random.randint(k_ctx, (B3,), 0, N_CTX, dtype=jnp.int32)
    f13 = jax.random.randint(k_f1, (B3,), 0, N_STATES, dtype=jnp.int32)
    f23 = jax.random.randint(k_f2, (B3,), 0, N_STATES, dtype=jnp.int32)
    _check(params, ctx3, f13, f23, args.ctx_scale, block_b=256)

    print("KERNEL_OK")
</pallas_src>

<mosaic_0001>
module attributes {stable_mosaic.version = 11 : i64} {
  func.func @_stepwise_mlp_kernel(%arg0: i32, %arg1: memref<8x3xi32, #tpu.memory_space<vmem>>, %arg2: memref<40x256xf32, #tpu.memory_space<vmem>>, %arg3: memref<1x128xf32, #tpu.memory_space<vmem>>, %arg4: memref<128x128xf32, #tpu.memory_space<vmem>>, %arg5: memref<1x128xf32, #tpu.memory_space<vmem>>, %arg6: memref<128x8xf32, #tpu.memory_space<vmem>>, %arg7: memref<1x8xf32, #tpu.memory_space<vmem>>, %arg8: memref<8x8xf32, #tpu.memory_space<vmem>>, %arg9: memref<8x128xf32, #tpu.memory_space<vmem>>, %arg10: memref<8x128xf32, #tpu.memory_space<vmem>>) attributes {dimension_semantics = [#tpu.dimension_semantics<parallel>], iteration_bounds = array<i64: 1>, scalar_prefetch = 0 : i64, scratch_operands = 0 : i64, tpu.core_type = #tpu.core_type<tc>, window_params = [{transform_indices = @transform_0, window_bounds = array<i64: 8, 3>}, {pipeline_mode = #tpu.pipeline_mode<synchronous>, transform_indices = @transform_1, window_bounds = array<i64: 40, 256>}, {pipeline_mode = #tpu.pipeline_mode<synchronous>, transform_indices = @transform_2, window_bounds = array<i64: 1, 128>}, {pipeline_mode = #tpu.pipeline_mode<synchronous>, transform_indices = @transform_3, window_bounds = array<i64: 128, 128>}, {pipeline_mode = #tpu.pipeline_mode<synchronous>, transform_indices = @transform_4, window_bounds = array<i64: 1, 128>}, {pipeline_mode = #tpu.pipeline_mode<synchronous>, transform_indices = @transform_5, window_bounds = array<i64: 128, 8>}, {pipeline_mode = #tpu.pipeline_mode<synchronous>, transform_indices = @transform_6, window_bounds = array<i64: 1, 8>}, {transform_indices = @transform_7, window_bounds = array<i64: 8, 8>}, {transform_indices = @transform_8, window_bounds = array<i64: 8, 128>}, {transform_indices = @transform_9, window_bounds = array<i64: 8, 128>}]} {
    %c0 = arith.constant 0 : index
    %c0_0 = arith.constant 0 : index
    %0 = vector.load %arg1[%c0, %c0_0] : memref<8x3xi32, #tpu.memory_space<vmem>>, vector<8x3xi32>
    %1 = tpu.iota {dimensions = array<i32: 1>} : vector<1x40xi32>
    %2 = vector.extract_strided_slice %0 {offsets = [0, 0], sizes = [8, 1], strides = [1, 1]} : vector<8x3xi32> to vector<8x1xi32>
    %3 = vector.broadcast %1 : vector<1x40xi32> to vector<8x40xi32>
    %4 = vector.broadcast %2 : vector<8x1xi32> to vector<8x40xi32>
    %5 = arith.cmpi eq, %3, %4 : vector<8x40xi32>
    %6 = vector.extract_strided_slice %0 {offsets = [0, 1], sizes = [8, 1], strides = [1, 1]} : vector<8x3xi32> to vector<8x1xi32>
    %c2_i32 = arith.constant 2 : i32
    %7 = vector.broadcast %c2_i32 : i32 to vector<8x1xi32>
    %8 = arith.addi %6, %7 : vector<8x1xi32>
    %9 = vector.broadcast %1 : vector<1x40xi32> to vector<8x40xi32>
    %10 = vector.broadcast %8 : vector<8x1xi32> to vector<8x40xi32>
    %11 = arith.cmpi eq, %9, %10 : vector<8x40xi32>
    %12 = arith.ori %5, %11 : vector<8x40xi1>
    %13 = vector.extract_strided_slice %0 {offsets = [0, 2], sizes = [8, 1], strides = [1, 1]} : vector<8x3xi32> to vector<8x1xi32>
    %c2_i32_1 = arith.constant 2 : i32
    %14 = vector.broadcast %c2_i32_1 : i32 to vector<8x1xi32>
    %15 = arith.addi %13, %14 : vector<8x1xi32>
    %c16_i32 = arith.constant 16 : i32
    %16 = vector.broadcast %c16_i32 : i32 to vector<8x1xi32>
    %17 = arith.addi %15, %16 : vector<8x1xi32>
    %18 = vector.broadcast %1 : vector<1x40xi32> to vector<8x40xi32>
    %19 = vector.broadcast %17 : vector<8x1xi32> to vector<8x40xi32>
    %20 = arith.cmpi eq, %18, %19 : vector<8x40xi32>
    %21 = arith.ori %12, %20 : vector<8x40xi1>
    %22 = arith.extui %21 : vector<8x40xi1> to vector<8x40xi32>
    %23 = arith.sitofp %22 : vector<8x40xi32> to vector<8x40xf32>
    %c0_2 = arith.constant 0 : index
    %c0_3 = arith.constant 0 : index
    %24 = vector.load %arg2[%c0_2, %c0_3] : memref<40x256xf32, #tpu.memory_space<vmem>>, vector<40x256xf32>
    %cst = arith.constant dense<0.000000e+00> : vector<8x256xf32>
    %25 = tpu.matmul %23, %24, %cst {dimension_numbers = #tpu.dot_dimension_numbers<[1], [0], [0], [1], [0, 0, 1, 1], [], []>} : vector<8x40xf32>, vector<40x256xf32>, vector<8x256xf32> -> vector<8x256xf32>
    %26 = vector.extract_strided_slice %25 {offsets = [0, 0], sizes = [8, 128], strides = [1, 1]} : vector<8x256xf32> to vector<8x128xf32>
    %c0_4 = arith.constant 0 : index
    %c0_5 = arith.constant 0 : index
    %27 = vector.load %arg3[%c0_4, %c0_5] : memref<1x128xf32, #tpu.memory_space<vmem>>, vector<1x128xf32>
    %28 = vector.broadcast %27 : vector<1x128xf32> to vector<8x128xf32>
    %29 = arith.addf %26, %28 : vector<8x128xf32>
    %cst_6 = arith.constant 0.000000e+00 : f32
    %30 = vector.broadcast %cst_6 : f32 to vector<8x128xf32>
    %31 = arith.maximumf %29, %30 : vector<8x128xf32>
    %c0_7 = arith.constant 0 : index
    %c0_8 = arith.constant 0 : index
    %32 = vector.load %arg4[%c0_7, %c0_8] : memref<128x128xf32, #tpu.memory_space<vmem>>, vector<128x128xf32>
    %cst_9 = arith.constant dense<0.000000e+00> : vector<8x128xf32>
    %33 = tpu.matmul %31, %32, %cst_9 {dimension_numbers = #tpu.dot_dimension_numbers<[1], [0], [0], [1], [0, 0, 1, 1], [], []>} : vector<8x128xf32>, vector<128x128xf32>, vector<8x128xf32> -> vector<8x128xf32>
    %34 = vector.extract_strided_slice %25 {offsets = [0, 128], sizes = [8, 128], strides = [1, 1]} : vector<8x256xf32> to vector<8x128xf32>
    %35 = arith.addf %33, %34 : vector<8x128xf32>
    %c0_10 = arith.constant 0 : index
    %c0_11 = arith.constant 0 : index
    %36 = vector.load %arg5[%c0_10, %c0_11] : memref<1x128xf32, #tpu.memory_space<vmem>>, vector<1x128xf32>
    %37 = vector.broadcast %36 : vector<1x128xf32> to vector<8x128xf32>
    %38 = arith.addf %35, %37 : vector<8x128xf32>
    %cst_12 = arith.constant 0.000000e+00 : f32
    %39 = vector.broadcast %cst_12 : f32 to vector<8x128xf32>
    %40 = arith.maximumf %38, %39 : vector<8x128xf32>
    %c0_13 = arith.constant 0 : index
    %c0_14 = arith.constant 0 : index
    %41 = vector.load %arg6[%c0_13, %c0_14] : memref<128x8xf32, #tpu.memory_space<vmem>>, vector<128x8xf32>
    %cst_15 = arith.constant dense<0.000000e+00> : vector<8x8xf32>
    %42 = tpu.matmul %40, %41, %cst_15 {dimension_numbers = #tpu.dot_dimension_numbers<[1], [0], [0], [1], [0, 0, 1, 1], [], []>} : vector<8x128xf32>, vector<128x8xf32>, vector<8x8xf32> -> vector<8x8xf32>
    %c0_16 = arith.constant 0 : index
    %c0_17 = arith.constant 0 : index
    %43 = vector.load %arg7[%c0_16, %c0_17] : memref<1x8xf32, #tpu.memory_space<vmem>>, vector<1x8xf32>
    %44 = vector.broadcast %43 : vector<1x8xf32> to vector<8x8xf32>
    %45 = arith.addf %42, %44 : vector<8x8xf32>
    %c0_18 = arith.constant 0 : index
    %c0_19 = arith.constant 0 : index
    %46 = vector.load %arg8[%c0_18, %c0_19] : memref<8x8xf32, #tpu.memory_space<vmem>>, vector<8x8xf32>
    tpu.vector_store %arg8[%c0_18, %c0_19], %45 {strides = array<i32>} : memref<8x8xf32, #tpu.memory_space<vmem>>, vector<8x8xf32>,
    %c0_20 = arith.constant 0 : index
    %c0_21 = arith.constant 0 : index
    %47 = vector.load %arg9[%c0_20, %c0_21] : memref<8x128xf32, #tpu.memory_space<vmem>>, vector<8x128xf32>
    tpu.vector_store %arg9[%c0_20, %c0_21], %31 {strides = array<i32>} : memref<8x128xf32, #tpu.memory_space<vmem>>, vector<8x128xf32>,
    %c0_22 = arith.constant 0 : index
    %c0_23 = arith.constant 0 : index
    %48 = vector.load %arg10[%c0_22, %c0_23] : memref<8x128xf32, #tpu.memory_space<vmem>>, vector<8x128xf32>
    tpu.vector_store %arg10[%c0_22, %c0_23], %40 {strides = array<i32>} : memref<8x128xf32, #tpu.memory_space<vmem>>, vector<8x128xf32>,
    return
  }
  func.func @transform_0(%arg0: i32) -> (i32, i32) {
    %c0_i32 = arith.constant 0 : i32
    %c0_i32_0 = arith.constant 0 : i32
    return %arg0, %c0_i32 : i32, i32
  }
  func.func @transform_1(%arg0: i32) -> (i32, i32) {
    %c0_i32 = arith.constant 0 : i32
    %c0_i32_0 = arith.constant 0 : i32
    %c0_i32_1 = arith.constant 0 : i32
    return %c0_i32, %c0_i32_0 : i32, i32
  }
  func.func @transform_2(%arg0: i32) -> (i32, i32) {
    %c0_i32 = arith.constant 0 : i32
    %c0_i32_0 = arith.constant 0 : i32
    %c0_i32_1 = arith.constant 0 : i32
    return %c0_i32, %c0_i32_0 : i32, i32
  }
  func.func @transform_3(%arg0: i32) -> (i32, i32) {
    %c0_i32 = arith.constant 0 : i32
    %c0_i32_0 = arith.constant 0 : i32
    %c0_i32_1 = arith.constant 0 : i32
    return %c0_i32, %c0_i32_0 : i32, i32
  }
  func.func @transform_4(%arg0: i32) -> (i32, i32) {
    %c0_i32 = arith.constant 0 : i32
    %c0_i32_0 = arith.constant 0 : i32
    %c0_i32_1 = arith.constant 0 : i32
    return %c0_i32, %c0_i32_0 : i32, i32
  }
  func.func @transform_5(%arg0: i32) -> (i32, i32) {
    %c0_i32 = arith.constant 0 : i32
    %c0_i32_0 = arith.constant 0 : i32
    %c0_i32_1 = arith.constant 0 : i32
    return %c0_i32, %c0_i32_0 : i32, i32
  }
  func.func @transform_6(%arg0: i32) -> (i32, i32) {
    %c0_i32 = arith.constant 0 : i32
    %c0_i32_0 = arith.constant 0 : i32
    %c0_i32_1 = arith.constant 0 : i32
    return %c0_i32, %c0_i32_0 : i32, i32
  }
  func.func @transform_7(%arg0: i32) -> (i32, i32) {
    %c0_i32 = arith.constant 0 : i32
    %c0_i32_0 = arith.constant 0 : i32
    return %arg0, %c0_i32 : i32, i32
  }
  func.func @transform_8(%arg0: i32) -> (i32, i32) {
    %c0_i32 = arith.constant 0 : i32
    %c0_i32_0 = arith.constant 0 : i32
    return %arg0, %c0_i32 : i32, i32
  }
  func.func @transform_9(%arg0: i32) -> (i32, i32) {
    %c0_i32 = arith.constant 0 : i32
    %c0_i32_0 = arith.constant 0 : i32
    return %arg0, %c0_i32 : i32, i32
  }
}

</mosaic_0001>

<bundles_post_ra>
// kernel: stepwise_mlp_forward.1
= control target key start
LH: loop header
LB: loop body
LE: loop exit
PB: predicated region body
PF: predicated region fallthrough
CT: control target
= control target key end

     0   :  { %15 = vsyncpa [#allocation3], 0  ;;  %v302_v1 = vmov 0   ;;  %v303_v3 = vmov 2   ;;  %s505_s0 = inlined_call_operand.vmem [shape: s32[8,3], index: 0, kind: input, shape index: {}]   ;;  %s506_s1 = inlined_call_operand.vmem [shape: f32[40,256], index: 1, kind: input, shape index: {}]   ;;  %s507_s2 = inlined_call_operand.vmem [shape: f32[1,128], index: 2, kind: input, shape index: {}]   ;;  %s508_s3 = inlined_call_operand.vmem [shape: f32[128,128], index: 3, kind: input, shape index: {}]   ;;  %s509_s4 = inlined_call_operand.vmem [shape: f32[1,128], index: 4, kind: input, shape index: {}]   ;;  %s510_s5 = inlined_call_operand.vmem [shape: f32[128,8], index: 5, kind: input, shape index: {}]   ;;  %s511_s6 = inlined_call_operand.vmem [shape: f32[1,8], index: 6, kind: input, shape index: {}]   ;;  %s512_s7 = inlined_call_operand.vmem [shape: f32[8,8], index: 7, kind: output, shape index: {0}]   ;;  %s513_s8 = inlined_call_operand.hbm [shape: f32[8,128], index: 8, kind: output, shape index: {1}]   ;;  %s514_s9 = inlined_call_operand.hbm [shape: f32[8,128], index: 9, kind: output, shape index: {2}]  }
   0x1   :  { %v31_v0 = vld [vmem:[%s505_s0] sm:$0xff]  ;;  %243 = vset.pattern.permute.xlu0 %v302_v1  ;;  %245 = vset.pattern.permute.xlu1 %v303_v3 }
   0x2   :  { %v38_v2 = vadd.s32 2, %v31_v0  ;;  %35 = vperm.xlu0 %243, %v31_v0  }
   0x3   :  { %16 = vsyncpa [#allocation5], 0  ;;  %v304_v5 = vmov 1   ;;  %v60_v6 = vld [vmem:[%s506_s1 + $0x40] sm:$0xff]  ;;  %v61_v7 = vld [vmem:[%s506_s1 + $0x48] sm:$0xff]  ;;  %v32_v28 = vlaneseq  ;;  %vm62_vm4 = vcmask 326656  }
   0x4   :  { %v44_v4 = vadd.s32 16, %v38_v2  ;;  %v58_v8 = vld [vmem:[%s506_s1 + $0x30] sm:$0xff]  ;;  %77 = vmatpush.msra.mxu0 %v60_v6  ;;  %97 = vmatpush.msra.mxu1 %v61_v7  ;;  %v59_v9 = vld [vmem:[%s506_s1 + $0x38] sm:$0xff]  ;;  %v56_v10 = vld [vmem:[%s506_s1 + $0x20] sm:$0xff]  ;;  %v305_v34 = vmov 0.0   ;;  %s306_s26 = smov [#allocation2]  }
   0x5   :  { %v57_v11 = vld [vmem:[%s506_s1 + $0x28] sm:$0xff]  ;;  %v54_v12 = vld [vmem:[%s506_s1 + $0x10] sm:$0xff]  ;;  %v55_v13 = vld [vmem:[%s506_s1 + $0x18] sm:$0xff]  ;;  %v33_v31 = vand.u32 127, %v32_v28  ;;  %s205_s27 = sshll.u32 %s306_s26, 4  ;;  %s207_s30 = sshll.u32 %s513_s8, 4  ;;  %s206_s27 = int_to_ptr.vmem [resolvable:$true] %s205_s27  ;;  %s208_s30 = int_to_ptr.hbm [resolvable:$true] %s207_s30 }
   0x6   :  { %46 = vperm.xlu1 %245, %v44_v4   ;;  %78 = vmatpush.msra.mxu0 %v58_v8  ;;  %v52_v14 = vld [vmem:[%s506_s1] sm:$0xff]  ;;  %v53_v15 = vld [vmem:[%s506_s1 + $0x8] sm:$0xff]  ;;  %v127_v16 = vld [vmem:[%s508_s3 + $0x78] sm:$0xff]  ;;  %s218_s12 = sshll.u32 %s514_s9, 4  ;;  %vm194_vm6 = vcmask 64512   ;;  %s219_s12 = int_to_ptr.hbm [resolvable:$true] %s218_s12 }
   0x7   :  { %98 = vmatpush.msra.mxu1 %v59_v9  ;;  %v126_v17 = vld [vmem:[%s508_s3 + $0x70] sm:$0xff]  ;;  %128 = vmatpush.msra.mxu2 %v127_v16  ;;  %v125_v18 = vld [vmem:[%s508_s3 + $0x68] sm:$0xff]  ;;  %v124_v19 = vld [vmem:[%s508_s3 + $0x60] sm:$0xff] }
   0x8   :  { %79 = vmatpush.msra.mxu0 %v56_v10  ;;  %v123_v20 = vld [vmem:[%s508_s3 + $0x58] sm:$0xff]  ;;  %v122_v21 = vld [vmem:[%s508_s3 + $0x50] sm:$0xff]  ;;  %v121_v22 = vld [vmem:[%s508_s3 + $0x48] sm:$0xff] }
   0x9   :  { %99 = vmatpush.msra.mxu1 %v57_v11  ;;  %129 = vmatpush.msra.mxu2 %v126_v17  ;;  %v120_v23 = vld [vmem:[%s508_s3 + $0x40] sm:$0xff]  ;;  %v119_v24 = vld [vmem:[%s508_s3 + $0x38] sm:$0xff]  ;;  %v118_v25 = vld [vmem:[%s508_s3 + $0x30] sm:$0xff] }
   0xa   :  { %244 = vset.pattern.permute.xlu0 %v304_v5  ;;  %80 = vmatpush.msra.mxu0 %v54_v12  ;;  %v117_v27 = vld [vmem:[%s508_s3 + $0x28] sm:$0xff]  ;;  %v116_v29 = vld [vmem:[%s508_s3 + $0x20] sm:$0xff]  ;;  %v115_v30 = vld [vmem:[%s508_s3 + $0x18] sm:$0xff] }
   0xb   :  { %40 = vperm.xlu0 %244, %v38_v2   ;;  %100 = vmatpush.msra.mxu1 %v55_v13  ;;  %v114_v36 = vld [vmem:[%s508_s3 + $0x10] sm:$0xff]  ;;  %v113_v37 = vld [vmem:[%s508_s3 + $0x8] sm:$0xff]  ;;  %v112_v38 = vld [vmem:[%s508_s3] sm:$0xff] }
   0xc   :  { %81 = vmatpush.msra.mxu0 %v52_v14  ;;  %130 = vmatpush.msra.mxu2 %v125_v18  ;;  %v169_v39 = vld [vmem:[%s510_s5 + $0x78] sm:$0xff]  ;;  %v168_v40 = vld [vmem:[%s510_s5 + $0x70] sm:$0xff]  ;;  %v167_v41 = vld [vmem:[%s510_s5 + $0x68] sm:$0xff] }
   0xd   :  { %101 = vmatpush.msra.mxu1 %v53_v15  ;;  %174 = vmatpush.msra.mxu3 %v169_v39  ;;  %v166_v42 = vld [vmem:[%s510_s5 + $0x60] sm:$0xff]  ;;  %v165_v43 = vld [vmem:[%s510_s5 + $0x58] sm:$0xff]  ;;  %v164_v44 = vld [vmem:[%s510_s5 + $0x50] sm:$0xff] }
   0xe   :  { %131 = vmatpush.msra.mxu2 %v124_v19  ;;  %v163_v45 = vld [vmem:[%s510_s5 + $0x48] sm:$0xff]  ;;  %v162_v46 = vld [vmem:[%s510_s5 + $0x40] sm:$0xff]  ;;  %v161_v47 = vld [vmem:[%s510_s5 + $0x38] sm:$0xff] }
   0xf   :  { %175 = vmatpush.msra.mxu3 %v168_v40  ;;  %v160_v48 = vld [vmem:[%s510_s5 + $0x30] sm:$0xff]  ;;  %v159_v49 = vld [vmem:[%s510_s5 + $0x28] sm:$0xff]  ;;  %v158_v50 = vld [vmem:[%s510_s5 + $0x20] sm:$0xff] }
  0x10   :  { %132 = vmatpush.msra.mxu2 %v123_v20  ;;  %v247_v51 = vld [vmem:[%s507_s2] ss:$0 sm:$0xff]  ;;  %v157_v55 = vld [vmem:[%s510_s5 + $0x18] sm:$0xff]  ;;  %v156_v56 = vld [vmem:[%s510_s5 + $0x10] sm:$0xff] }
  0x11   :  { %176 = vmatpush.msra.mxu3 %v167_v41  ;;  %v155_v57 = vld [vmem:[%s510_s5 + $0x8] sm:$0xff]  ;;  %v154_v58 = vld [vmem:[%s510_s5] sm:$0xff]  ;;  %s307_s5 = smov [#allocation4]  }
  0x12   :  { %133 = vmatpush.msra.mxu2 %v122_v21  ;;  %v248_v59 = vld [vmem:[%s509_s4] ss:$0 sm:$0xff]  ;;  %s216_s10 = sshll.u32 %s307_s5, 4  ;;  %s217_s10 = int_to_ptr.vmem [resolvable:$true] %s216_s10 }
  0x13   :  { %246 = vset.pattern.permute.xlu0 %v303_v3  ;;  %177 = vmatpush.msra.mxu3 %v166_v42  ;;  %v249_v1 = vld [vmem:[%s511_s6] ss:$0 sm:$0xff] }
  0x14   :  { %134 = vmatpush.msra.mxu2 %v121_v22 }
  0x15   :  { %178 = vmatpush.msra.mxu3 %v165_v43 }
  0x16   :  { %135 = vmatpush.msra.mxu2 %v120_v23 }
  0x17   :  { %179 = vmatpush.msra.mxu3 %v164_v44 }
  0x18   :  { %136 = vmatpush.msra.mxu2 %v119_v24 }
  0x19   :  { %180 = vmatpush.msra.mxu3 %v163_v45 }
  0x1a   :  { %137 = vmatpush.msra.mxu2 %v118_v25 }
  0x1b   :  { %181 = vmatpush.msra.mxu3 %v162_v46 }
  0x1c   :  { %138 = vmatpush.msra.mxu2 %v117_v27 }
  0x1d   :  { %182 = vmatpush.msra.mxu3 %v161_v47 }
  0x1e   :  { %139 = vmatpush.msra.mxu2 %v116_v29 }
  0x1f   :  { %183 = vmatpush.msra.mxu3 %v160_v48 }
  0x20   :  { %140 = vmatpush.msra.mxu2 %v115_v30 }
  0x21   :  { %184 = vmatpush.msra.mxu3 %v159_v49 }
  0x22   :  { %141 = vmatpush.msra.mxu2 %v114_v36 }
  0x23   :  { %185 = vmatpush.msra.mxu3 %v158_v50 }
  0x24   :  { %142 = vmatpush.msra.mxu2 %v113_v37 }
  0x25   :  { %186 = vmatpush.msra.mxu3 %v157_v55 }
  0x26   :  { %143 = vmatpush.msra.mxu2 %v112_v38 }
  0x27   :  { %187 = vmatpush.msra.mxu3 %v156_v56 }
  0x29   :  { %188 = vmatpush.msra.mxu3 %v155_v57 }
  0x2b   :  { %189 = vmatpush.msra.mxu3 %v154_v58 }
  0x74   :  { %v36_v26 = vpop.permute.xlu0 %35 }
  0x75   :  { %vm37_vm1 = vcmp.eq.s32.totalorder %v33_v31, %v36_v26 }
  0x78   :  { %v47_v32 = vpop.permute.xlu1 %46 }
  0x79   :  { %vm48_vm0 = vcmp.eq.s32.totalorder %v33_v31, %v47_v32 }
  0x7d   :  { %v41_v33 = vpop.permute.xlu0 %40 }
  0x7e   :  { %vm42_vm2 = vcmp.eq.s32.totalorder %v33_v31, %v41_v33 }
  0x7f   :  { %vm43_vm3 = vmor %vm37_vm1, %vm42_vm2 }
  0x80   :  { %vm49_vm5 = vmor %vm43_vm3, %vm48_vm0 }
  0x81   :  { %v234_v35 = vsel %vm49_vm5, 1.0, %v305_v34 }
  0x82   :  { %235 = vmatmul.msk.f32.vlgmr.msra.gmra.mxu0 %vm62_vm4, %v234_v35  ;;  %236 = vmatmul.msk.f32.vlgmr.msra.gmra.mxu1 %vm62_vm4, %v234_v35 }
  0xff   :  { %v83_v52 = vpop.f32.mrf.mxu0  ;;  %v103_v60 = vpop.f32.mrf.mxu1 }
 0x100   :  { %v110_v53 = vadd.f32 %v247_v51, %v83_v52 }
 0x102   :  { %v111_v54 = vmax.f32 %v110_v53, 0.0 }
 0x104   :  { %196 = vst [vmem:[#allocation2] sm:$0xff] %v111_v54  ;;  %144 = vmatmul.f32.vlgmr.msra.gmra.mxu2 %v111_v54 }
 0x105   :  { %210 = dma.vmem_to_hbm [thread:$0]  %s206_s27, 128, %s208_s30, [#allocation3]  }
 0x187   :  { %v145_v61 = vpop.f32.mrf.mxu2 }
 0x188   :  { %v146_v62 = vadd.f32 %v145_v61, %v103_v60 }
 0x18a   :  { %v152_v63 = vadd.f32 %v248_v59, %v146_v62 }
 0x18c   :  { %v153_v0 = vmax.f32 %v152_v63, 0.0 }
 0x18e   :  { %190 = vmatmul.f32.vlgmr.msra.gmra.mxu3 %v153_v0  ;;  %197 = vst [vmem:[#allocation4] sm:$0xff] %v153_v0 }
 0x18f   :  { %221 = dma.vmem_to_hbm [thread:$0]  %s217_s10, 128, %s219_s12, [#allocation5]  }
 0x211   :  { %v191_v2 = vpop.f32.mrf.mxu3 }
 0x212   :  { %v192_v3 = vadd.f32 %v249_v1, %v191_v2 }
 0x214   :  { %195 = vst.msk [vmem:[%s512_s7] sm:$0xff] %vm194_vm6, %v192_v3 }
 0x215   :  { %298 = dma.done.wait [#allocation3], 128  }
 0x216   :  { %299 = vsyncadd [#allocation3], 4294967168 }
 0x217   :  { %300 = dma.done.wait [#allocation5], 128  }
 0x218   :  { %301 = vsyncadd [#allocation5], 4294967168 }
 0x219   :  { %232 = vsyncpa [#allocation3], 1 }
 0x21a   :  { %233 = vsyncpa [#allocation5], 1 }

</bundles_post_ra>
